<compile_context>
chip_gen: v7x
topology: tpu7x:2x2x1
jax: 0.10.0
libtpu: 0.0.40
codegen_flags: <defaults>
</compile_context>

<pallas_src>
import functools

import jax
import jax.numpy as jnp
from jax.experimental import pallas as pl
from jax.experimental.pallas import tpu as pltpu


def _round_up(a, b):
    return ((a + b - 1) // b) * b


def _effective_width(e):
    # Lane-pad only when it is cheap relative to x/out HBM traffic:
    # E <= 128 stays unpadded (a masked vst beats 4x HBM bytes at E=32);
    # larger E is rounded up to a lane-dense multiple of 128.
    return e if e <= 128 else _round_up(e, 128)


def _resident_spec(shape):
    """BlockSpec for a grid-invariant input: constant index_map, single buffer."""
    index_map = lambda i: (0,) * len(shape)
    buffered = getattr(pl, "Buffered", None)
    if buffered is not None:
        return pl.BlockSpec(shape, index_map, pipeline_mode=buffered(1))
    return pl.BlockSpec(shape, index_map)


def fuse_highway_params(wp, bp, wg, bg, *, matmul_dtype=jnp.bfloat16):
    """One-time parameter prep (hoisted out of the per-call forward pass).

    wp/wg: (E, E) PyTorch Linear layout (out, in); bp/bg: (E,).
    Returns w_fused (2, Ee, Ee) in matmul_dtype (already transposed for x @ W^T)
    and b_fused (2, 1, Ee) float32, zero-padded to the effective width Ee.
    """
    e = wp.shape[0]
    ee = _effective_width(e)
    w = jnp.zeros((2, ee, ee), jnp.float32)
    w = w.at[0, :e, :e].set(wp.T).at[1, :e, :e].set(wg.T)
    b = jnp.zeros((2, 1, ee), jnp.float32)
    b = b.at[0, 0, :e].set(bp).at[1, 0, :e].set(bg)
    return w.astype(matmul_dtype), b


def highway_kernel(x_ref, w_ref, b_ref, o_ref, *, approx_gate):
    x = x_ref[...]                                        # (tm, Ee), x dtype
    xm = x if x.dtype == w_ref.dtype else x.astype(w_ref.dtype)

    # Two dots against the resident stacked weight slab; f32 accumulation.
    yp = jnp.dot(xm, w_ref[0], preferred_element_type=jnp.float32) + b_ref[0]
    yg = jnp.dot(xm, w_ref[1], preferred_element_type=jnp.float32) + b_ref[1]

    proj = jnp.maximum(yp, 0.0)                                    # relu
    gate = pl.reciprocal(1.0 + jnp.exp(-yg), approx=approx_gate)   # sigmoid (EUP)

    # Highway combine: x + g*(p - x)  ==  p*g + (1-g)*x, one fewer mul/sub.
    xf = x.astype(jnp.float32)
    o_ref[...] = (xf + gate * (proj - xf)).astype(o_ref.dtype)


def highway_forward(x, w_fused, b_fused, *, tm=None):
    """x: (N, E).  w_fused/b_fused: from fuse_highway_params (already fused)."""
    n, e = x.shape
    ee = w_fused.shape[-1]
    assert w_fused.shape == (2, ee, ee) and b_fused.shape == (2, 1, ee) and ee >= e

    itemsize = jnp.dtype(x.dtype).itemsize
    sub = {4: 8, 2: 16, 1: 32}.get(itemsize, 8)       # native sublane pack

    if tm is None:
        tm = 256 if ee >= 1024 else 512               # VMEM headroom for large E

    # Balanced row tiling; keep >=2 grid steps when there is enough work so
    # both v7x TensorCores get rows (near-neutral on single-core chips).
    g = pl.cdiv(n, tm)
    if n >= 2 * sub:
        g = max(g, 2)
    tm_eff = _round_up(pl.cdiv(n, g), sub)
    g = pl.cdiv(n, tm_eff)                            # re-balance: no over-padding
    np_rows = g * tm_eff

    if np_rows != n or ee != e:
        xp = jnp.zeros((np_rows, ee), x.dtype).at[:n, :e].set(x)
    else:
        xp = x

    # Real VMEM footprint: single-buffered weights/bias + double-buffered I/O
    # tiles + elementwise temporaries, with margin.
    w_bytes = w_fused.size * jnp.dtype(w_fused.dtype).itemsize
    b_bytes = b_fused.size * jnp.dtype(b_fused.dtype).itemsize
    io_bytes = 2 * 2 * tm_eff * ee * itemsize
    tmp_bytes = 6 * tm_eff * ee * 4
    vmem_limit = int(min(max(1.25 * (w_bytes + b_bytes + io_bytes + tmp_bytes)
                             + (2 << 20), 16 << 20), 64 << 20))

    cost = pl.CostEstimate(
        flops=int(2 * np_rows * ee * (2 * ee) + 8 * np_rows * ee),
        transcendentals=int(np_rows * ee),
        bytes_accessed=int(2 * np_rows * ee * itemsize + w_bytes + b_bytes),
    )

    approx_gate = w_fused.dtype == jnp.bfloat16       # exact gate on strict f32 path

    out = pl.pallas_call(
        functools.partial(highway_kernel, approx_gate=approx_gate),
        out_shape=jax.ShapeDtypeStruct((np_rows, ee), x.dtype),
        grid=(g,),
        in_specs=[
            pl.BlockSpec((tm_eff, ee), lambda i: (i, 0)),   # x row tile
            _resident_spec((2, ee, ee)),                    # stacked weights (resident)
            _resident_spec((2, 1, ee)),                     # stacked biases (resident)
        ],
        out_specs=pl.BlockSpec((tm_eff, ee), lambda i: (i, 0)),
        compiler_params=pltpu.CompilerParams(
            # On v7x, pltpu.CORE_PARALLEL on this axis shards rows across both
            # TensorCores; plain "parallel" is the portable choice here.
            dimension_semantics=("parallel",),
            vmem_limit_bytes=vmem_limit),
        cost_estimate=cost,
    )(xp, w_fused, b_fused)

    if np_rows != n or ee != e:
        out = out[:n, :e]
    return out


def highway_ref(x, wp, bp, wg, bg):
    hi = jax.lax.Precision.HIGHEST
    proj = jax.nn.relu(jnp.dot(x, wp.T, precision=hi) + bp)
    gate = jax.nn.sigmoid(jnp.dot(x, wg.T, precision=hi) + bg)
    return proj * gate + (1.0 - gate) * x


if __name__ == "__main__":
    embed_size = 32      # e_word
    batch = 16           # rows of conv output fed to Highway

    key = jax.random.PRNGKey(0)
    kx, kwp, kbp, kwg, kbg = jax.random.split(key, 5)

    x = jax.random.normal(kx, (batch, embed_size), dtype=jnp.float32)
    # PyTorch Linear shapes: W (out, in), b (out,)
    wp = jax.random.normal(kwp, (embed_size, embed_size), dtype=jnp.float32) * 0.1
    bp = jax.random.normal(kbp, (embed_size,), dtype=jnp.float32) * 0.1
    wg = jax.random.normal(kwg, (embed_size, embed_size), dtype=jnp.float32) * 0.1
    bg = jax.random.normal(kbg, (embed_size,), dtype=jnp.float32) * 0.1

    ref = highway_ref(x, wp, bp, wg, bg)

    # Parameter fusion hoisted out of the forward pass (done once per model).
    w_f32, b_f32 = fuse_highway_params(wp, bp, wg, bg, matmul_dtype=jnp.float32)
    w_b16, b_b16 = fuse_highway_params(wp, bp, wg, bg, matmul_dtype=jnp.bfloat16)

    # 1) f32 weights path (tight check; exact gate reciprocal).
    out_f32 = jax.block_until_ready(highway_forward(x, w_f32, b_f32))
    assert out_f32.shape == ref.shape and out_f32.dtype == ref.dtype
    assert jnp.allclose(out_f32, ref, atol=1e-2, rtol=1e-2), "f32 path mismatch"

    # 2) Default fast path: bf16 MXU inputs / bf16 weights, f32 accumulate + combine.
    out_fast = jax.block_until_ready(highway_forward(x, w_b16, b_b16))
    assert jnp.allclose(out_fast, ref, atol=5e-2, rtol=5e-2), "bf16-MXU path mismatch"

    # 3) bf16 activations end-to-end (halves x / out HBM traffic on v6e/v7x).
    out_b16 = jax.block_until_ready(
        highway_forward(x.astype(jnp.bfloat16), w_b16, b_b16))
    assert out_b16.dtype == jnp.bfloat16
    assert jnp.allclose(out_b16.astype(jnp.float32), ref, atol=1e-1, rtol=1e-1), \
        "bf16-activation path mismatch"

    print("KERNEL_OK")
</pallas_src>

<mosaic_0001>
module attributes {stable_mosaic.version = 11 : i64} {
  func.func @highway_kernel(%arg0: i32, %arg1: memref<8x32xf32, #tpu.memory_space<vmem>>, %arg2: memref<2x32x32xf32, #tpu.memory_space<vmem>>, %arg3: memref<2x1x32xf32, #tpu.memory_space<vmem>>, %arg4: memref<8x32xf32, #tpu.memory_space<vmem>>) attributes {dimension_semantics = [#tpu.dimension_semantics<parallel>], iteration_bounds = array<i64: 2>, scalar_prefetch = 0 : i64, scratch_operands = 0 : i64, tpu.core_type = #tpu.core_type<tc>, window_params = [{transform_indices = @transform_0, window_bounds = array<i64: 8, 32>}, {pipeline_mode = #tpu.pipeline_mode<synchronous>, transform_indices = @transform_1, window_bounds = array<i64: 2, 32, 32>}, {pipeline_mode = #tpu.pipeline_mode<synchronous>, transform_indices = @transform_2, window_bounds = array<i64: 2, 1, 32>}, {transform_indices = @transform_3, window_bounds = array<i64: 8, 32>}]} {
    %c0 = arith.constant 0 : index
    %c0_0 = arith.constant 0 : index
    %0 = vector.load %arg1[%c0, %c0_0] : memref<8x32xf32, #tpu.memory_space<vmem>>, vector<8x32xf32>
    %c0_1 = arith.constant 0 : index
    %c0_2 = arith.constant 0 : index
    %c0_3 = arith.constant 0 : index
    %1 = vector.load %arg2[%c0_1, %c0_2, %c0_3] : memref<2x32x32xf32, #tpu.memory_space<vmem>>, vector<1x32x32xf32>
    %2 = vector.shape_cast %1 : vector<1x32x32xf32> to vector<32x32xf32>
    %cst = arith.constant dense<0.000000e+00> : vector<8x32xf32>
    %3 = tpu.matmul %0, %2, %cst {dimension_numbers = #tpu.dot_dimension_numbers<[1], [0], [0], [1], [0, 0, 1, 1], [], []>} : vector<8x32xf32>, vector<32x32xf32>, vector<8x32xf32> -> vector<8x32xf32>
    %c0_4 = arith.constant 0 : index
    %c0_5 = arith.constant 0 : index
    %c0_6 = arith.constant 0 : index
    %4 = vector.load %arg3[%c0_4, %c0_5, %c0_6] : memref<2x1x32xf32, #tpu.memory_space<vmem>>, vector<1x1x32xf32>
    %5 = vector.shape_cast %4 : vector<1x1x32xf32> to vector<1x32xf32>
    %6 = vector.broadcast %5 : vector<1x32xf32> to vector<8x32xf32>
    %7 = arith.addf %3, %6 : vector<8x32xf32>
    %c1 = arith.constant 1 : index
    %c0_7 = arith.constant 0 : index
    %c0_8 = arith.constant 0 : index
    %8 = vector.load %arg2[%c1, %c0_7, %c0_8] : memref<2x32x32xf32, #tpu.memory_space<vmem>>, vector<1x32x32xf32>
    %9 = vector.shape_cast %8 : vector<1x32x32xf32> to vector<32x32xf32>
    %cst_9 = arith.constant dense<0.000000e+00> : vector<8x32xf32>
    %10 = tpu.matmul %0, %9, %cst_9 {dimension_numbers = #tpu.dot_dimension_numbers<[1], [0], [0], [1], [0, 0, 1, 1], [], []>} : vector<8x32xf32>, vector<32x32xf32>, vector<8x32xf32> -> vector<8x32xf32>
    %c1_10 = arith.constant 1 : index
    %c0_11 = arith.constant 0 : index
    %c0_12 = arith.constant 0 : index
    %11 = vector.load %arg3[%c1_10, %c0_11, %c0_12] : memref<2x1x32xf32, #tpu.memory_space<vmem>>, vector<1x1x32xf32>
    %12 = vector.shape_cast %11 : vector<1x1x32xf32> to vector<1x32xf32>
    %13 = vector.broadcast %12 : vector<1x32xf32> to vector<8x32xf32>
    %14 = arith.addf %10, %13 : vector<8x32xf32>
    %cst_13 = arith.constant 0.000000e+00 : f32
    %15 = vector.broadcast %cst_13 : f32 to vector<8x32xf32>
    %16 = arith.maximumf %7, %15 : vector<8x32xf32>
    %cst_14 = arith.constant 0.000000e+00 : f32
    %17 = vector.broadcast %cst_14 : f32 to vector<8x32xf32>
    %18 = arith.subf %17, %14 : vector<8x32xf32>
    %19 = math.exp %18 : vector<8x32xf32>
    %cst_15 = arith.constant 1.000000e+00 : f32
    %20 = vector.broadcast %cst_15 : f32 to vector<8x32xf32>
    %21 = arith.addf %20, %19 : vector<8x32xf32>
    %22 = tpu.reciprocal %21 : vector<8x32xf32> -> vector<8x32xf32>
    %23 = arith.subf %16, %0 : vector<8x32xf32>
    %24 = arith.mulf %22, %23 : vector<8x32xf32>
    %25 = arith.addf %0, %24 : vector<8x32xf32>
    %c0_16 = arith.constant 0 : index
    %c0_17 = arith.constant 0 : index
    %26 = vector.load %arg4[%c0_16, %c0_17] : memref<8x32xf32, #tpu.memory_space<vmem>>, vector<8x32xf32>
    tpu.vector_store %arg4[%c0_16, %c0_17], %25 {strides = array<i32>} : memref<8x32xf32, #tpu.memory_space<vmem>>, vector<8x32xf32>,
    return
  }
  func.func @transform_0(%arg0: i32) -> (i32, i32) {
    %c0_i32 = arith.constant 0 : i32
    %c0_i32_0 = arith.constant 0 : i32
    return %arg0, %c0_i32 : i32, i32
  }
  func.func @transform_1(%arg0: i32) -> (i32, i32, i32) {
    %c0_i32 = arith.constant 0 : i32
    %c0_i32_0 = arith.constant 0 : i32
    %c0_i32_1 = arith.constant 0 : i32
    %c0_i32_2 = arith.constant 0 : i32
    return %c0_i32, %c0_i32_0, %c0_i32_1 : i32, i32, i32
  }
  func.func @transform_2(%arg0: i32) -> (i32, i32, i32) {
    %c0_i32 = arith.constant 0 : i32
    %c0_i32_0 = arith.constant 0 : i32
    %c0_i32_1 = arith.constant 0 : i32
    %c0_i32_2 = arith.constant 0 : i32
    return %c0_i32, %c0_i32_0, %c0_i32_1 : i32, i32, i32
  }
  func.func @transform_3(%arg0: i32) -> (i32, i32) {
    %c0_i32 = arith.constant 0 : i32
    %c0_i32_0 = arith.constant 0 : i32
    return %arg0, %c0_i32 : i32, i32
  }
}

</mosaic_0001>

<bundles_post_ra>
// kernel: tpu_custom_call.1
= control target key start
LH: loop header
LB: loop body
LE: loop exit
PB: predicated region body
PF: predicated region fallthrough
CT: control target
= control target key end

     0   :  { %8 = vsyncpa [#allocation3], 0  ;;  %s970_s0 = inlined_call_operand.hbm [shape: f32[16,32], index: 0, kind: input, shape index: {}]   ;;  %s971_s1 = inlined_call_operand.hbm [shape: f32[2,32,32], index: 1, kind: input, shape index: {}]   ;;  %s972_s2 = inlined_call_operand.vmem [shape: f32[2,1,32], index: 2, kind: input, shape index: {}]   ;;  %s973_s3 = inlined_call_operand.hbm [shape: f32[16,32], index: 3, kind: output, shape index: {}]  }
   0x1   :  { %10 = vsyncpa [#allocation3 + $0x1], 0 }
   0x2   :  { %11 = vsyncpa [#allocation6], 0 }
   0x3   :  { %12 = vsyncpa [#allocation4], 0 }
   0x4   :  { %14 = vsyncpa [#allocation4 + $0x1], 0  ;;  %s761_s12 = smov 0   ;;  %s763_s13 = smov 0  }
   0x5   :  { %s765_s14 = smov 0   ;;  %s767_s15 = smov 0  }
   0x6 LB: > { %s782_s16 = sadd.s32 4294967295, %s731_s15   ;;  %s474_s17 = sadd.s32 4294967294, %s731_s15   ;;  %s731_s15 = sphi %s767_s15, %s993_s15   ;;  %s727_s14 = sphi %s765_s14, %s992_s14   ;;  %s723_s13 = sphi %s763_s13, %s991_s13   ;;  %s719_s12 = sphi %s761_s12, %s990_s12  }
   0x7   : > { %p40_p0 = scmp.ne.s32.totalorder %s723_s13, %s719_s12  ;;  %p974_p1 = scmp.eq.s32.totalorder %s782_s16, 0 }
   0x8   : > { %p112_p3 = scmp.eq.s32.totalorder %s474_s17, 1  ;;  %p475_p5 = scmp.ge.s32.totalorder %s731_s15, 1 }
   0x9   : > { %p791_p4 = por %p974_p1, %p40_p0  ;;  %p119_p7 = scmp.lt.s32.totalorder %s731_s15, 3 }
   0xa   : > { %p796_p6 = por %p112_p3, %p40_p0  ;;  %s733_s21 = smov [#allocation5]  }
   0xb   : > { %s977_s18 = scalar_select %p791_p4, 1, 0 }
   0xc   : > { %s978_s19 = scalar_select %p796_p6, 1, 0 }
   0xd   : > { %p801_p8 = pnand %p475_p5, %p119_p7  ;;  %s131_s22 = sshll.u32 %s733_s21, 4  ;;  %s805_s22 = int_to_ptr.vmem [resolvable:$true] %s131_s22 }
   0xe   : > { %s817_s24 = sadd.s32 1, %s731_s15   ;;  %s27_s25 = sadd.s32 1, %s727_s14 }
   0xf   : > { %s979_s20 = scalar_select %p801_p8, 1, 0 }
  0x10   : > { %p545_p9 = pneg %p801_p8  ;;  %s24_s26 = ssub.s32 %s731_s15, %s817_s24 }
  0x11   : > { %s603_s29 = scalar_lea.hbm %s971_s1, 1024 }
  0x12   : > { %p812_p11 = pnand %p545_p9, %p974_p1  ;;  %p604_p12 = scmp.ne.s32.totalorder %s971_s1, %s603_s29 }
  0x13   : > { %p610_p5 = scmp.lt.u32.totalorder %s603_s29, %s971_s1 }
  0x14   : > { %p605_p13 = pneg %p812_p11 }
  0x16   : > { %p606_p0 = pnand %p605_p13, %p604_p12 }
  0x18   : > { %p607_p3 = pneg %p606_p0 }
  0x1a   : > { %p612_p7 = pnand %p610_p5, %p607_p3 }
  0x1c   : > { %615 = shalt.err (!%p612_p7)
}
  0x1d   : > { %s616_s7 = scalar_lea.vmem %s805_s22, 1024  ;;  %p624_p2 = scmp.lt.s32.totalorder %s805_s22, %s805_s22 }
  0x1e   : > { %p617_p9 = scmp.ne.s32.totalorder %s805_s22, %s616_s7  ;;  %p625_p6 = scmp.lt.s32.totalorder %s616_s7, %s616_s7 }
  0x20   : > { %p619_p10 = pnand %p617_p9, %p605_p13  ;;  %p626_p4 = por %p625_p6, %p624_p2 }
  0x22   : > { %p620_p1 = pneg %p619_p10 }
  0x24   : > { %p627_p8 = pnand %p626_p4, %p620_p1 }
  0x26   : > { %630 = shalt.err (!%p627_p8)
}
  0x27   : > { %s734_s8 = smov 128   ;;  %s735_s9 = smov 8  }
  0x28   : > { %548 = dma.hbm_to_vmem [thread:$0]  (!%p812_p11), %s971_s1, 1024, %s805_s22, [#allocation6], %s734_s8, %s734_s8, %s735_s9  }
  0x29   : > { %p25_p2 = scmp.eq.s32.totalorder %s24_s26, 0  ;;  %p34_p1 = scmp.ne.s32.totalorder %s727_s14, %s723_s13 }
  0x2a   : > { %p35_p4 = scmp.eq.s32.totalorder %s731_s15, 0  ;;  %p558_p6 = scmp.lt.s32.totalorder %s731_s15, 2 }
  0x2b   : > { %s848_s17 = scalar_select %p25_p2, %s727_s14, %s27_s25  }
  0x2c   : > { %p36_p8 = por %p35_p4, %p34_p1  ;;  %p981_p10 = scmp.eq.s32.totalorder %s782_s16, 1 }
  0x2d   : > { %s148_s27 = sand.u32 1, %s727_s14   ;;  %s479_s28 = sshll.u32 %s731_s15, 7 }
  0x2e   : > { %p852_p12 = por %p981_p10, %p34_p1  ;;  %s478_s29 = sshll.u32 %s148_s27, 3 }
  0x2f   : > { %s861_s4 = scalar_lea.hbm %s970_s0, %s479_s28  ;;  %s152_s22 = scalar_lea.vmem [#allocation2], %s478_s29 }
  0x30   : > { %s159_s25 = sshll.u32 %s152_s22, 4  ;;  %p863_p11 = pnand %p558_p6, %p36_p8  ;;  %s867_s25 = int_to_ptr.vmem [resolvable:$true] %s159_s25 }
  0x31   : > { %s149_s5 = scalar_lea.sflag [#allocation3], %s148_s27  ;;  %s631_s6 = scalar_lea.hbm %s861_s4, 128 }
  0x32   : > { %p632_p13 = scmp.ne.s32.totalorder %s861_s4, %s631_s6  ;;  %p633_p0 = pneg %p863_p11 }
  0x33   : > { %s636_s9 = scalar_lea.hbm %s970_s0, 256  ;;  %p637_p7 = scmp.lt.u32.totalorder %s861_s4, %s970_s0 }
  0x34   : > { %p634_p3 = pnand %p633_p0, %p632_p13  ;;  %p638_p9 = scmp.lt.u32.totalorder %s636_s9, %s631_s6 }
  0x35   : > { %p640_p1 = scmp.lt.u32.totalorder %s631_s6, %s861_s4 }
  0x36   : > { %p635_p5 = pneg %p634_p3  ;;  %p639_p2 = por %p638_p9, %p637_p7 }
  0x38   : > { %p641_p4 = por %p640_p1, %p639_p2 }
  0x3a   : > { %p642_p6 = pnand %p641_p4, %p635_p5 }
  0x3c   : > { %645 = shalt.err (!%p642_p6)
}
  0x3d   : > { %s646_s27 = scalar_lea.vmem %s867_s25, 128  ;;  %s736_s28 = smov [#allocation2]  }
  0x3e   : > { %p647_p8 = scmp.ne.s32.totalorder %s867_s25, %s646_s27  ;;  %s651_s29 = sshll.u32 %s736_s28, 4  ;;  %s652_s29 = int_to_ptr.vmem [resolvable:$false] %s651_s29 }
  0x3f   : > { %s653_s23 = scalar_lea.vmem %s652_s29, 256  ;;  %p654_p3 = scmp.lt.s32.totalorder %s867_s25, %s652_s29 }
  0x40   : > { %p649_p10 = pnand %p647_p8, %p633_p0  ;;  %p655_p7 = scmp.lt.s32.totalorder %s653_s23, %s646_s27 }
  0x42   : > { %p650_p13 = pneg %p649_p10  ;;  %p656_p9 = por %p655_p7, %p654_p3 }
  0x44   : > { %p657_p2 = pnand %p656_p9, %p650_p13 }
  0x46   : > { %660 = shalt.err (!%p657_p2)
}
  0x47   : > { %552 = dma.hbm_to_vmem [thread:$0]  (!%p863_p11), %s861_s4, 128, %s867_s25, %s149_s5  }
  0x48   : > { %p984_p5 = scmp.ne.s32.totalorder %s979_s20, 0 }
  0x49   : > { %s897_s30 = sand.u32 (!%p984_p5), 1, %s723_s13   ;;  %p985_p0 = scmp.ne.s32.totalorder (!%p984_p5), %s977_s18, 0 }
  0x4a   : > { %168 = sbr.rel (%p984_p5) target bundleno = 355 (0x163), region = 32  ;;  %s481_s22 = sshll.u32 (!%p984_p5), %s897_s30, 3 }
  0x4b   : > { %s171_s6 = scalar_lea.sflag (!%p984_p5), [#allocation3], %s897_s30  ;;  %s174_s7 = scalar_lea.vmem (!%p984_p5), [#allocation2], %s481_s22 }
  0x51   : > { %706 = dma.done.wait (%p985_p0), %s171_s6, 128  }
  0x52   : > { %708 = vsyncadd (%p985_p0), %s171_s6, 4294967168  ;;  %p986_p11 = scmp.eq.s32.totalorder %s782_s16, 0 }
  0x54   : > { %710 = dma.done.wait (%p986_p11), [#allocation6], 1024   ;;  %p987_p1 = pmov %p986_p11 }
  0x55   : > { %v737_v0 = vmov 0.0|0.0   ;;  %vm738_vm0 = vmmov 0   ;;  %v739_v1 = vmov 0.0   ;;  %v288_v2 = vld [vmem:[#allocation5 + $0x20] sm:$0xff]  ;;  %v289_v3 = vld [vmem:[#allocation5 + $0x28] sm:$0xff]  ;;  %v290_v4 = vld [vmem:[#allocation5 + $0x30] sm:$0xff] }
  0x56   : > { %712 = vsyncadd (%p987_p1), [#allocation6], 4294966272  ;;  %531 = vmatprep.subr.bf16.mxu1 %v737_v0  ;;  %522 = vmatprep.mubr.msk.f32.mxu1 %vm738_vm0, %v739_v1  ;;  %v532_v5 = vpack.c.bf16 %v289_v3, %v288_v2  ;;  %v291_v6 = vld [vmem:[#allocation5 + $0x38] sm:$0xff]  ;;  %v202_v7 = vld [vmem:[#allocation5] sm:$0xff]  ;;  %vm213_vm1 = vcmask 261120   ;;  %s490_s26 = sshll.u32 %s782_s16, 7 }
  0x57   : > { %525 = vmatprep.subr.bf16.mxu0 %v737_v0  ;;  %511 = vmatprep.mubr.msk.f32.mxu0 %vm738_vm0, %v739_v1  ;;  %v203_v8 = vld [vmem:[#allocation5 + $0x8] sm:$0xff]  ;;  %v204_v9 = vld [vmem:[#allocation5 + $0x10] sm:$0xff]  ;;  %v205_v10 = vld [vmem:[#allocation5 + $0x18] sm:$0xff]  ;;  %v535_v11 = vpack.c.bf16 %v291_v6, %v290_v4  ;;  %s200_s5 = scalar_lea.vmem [#allocation7], %s481_s22  ;;  %s925_s11 = scalar_lea.hbm %s973_s3, %s490_s26 }
  0x58   : > { %533 = vmatpush3.bf16.msra.mxu1 %v532_v5  ;;  %v526_v12 = vpack.c.bf16 %v203_v8, %v202_v7  ;;  %v529_v13 = vpack.c.bf16 %v205_v10, %v204_v9  ;;  %v201_v14 = vld [vmem:[%s174_s7] sm:$0xff]  ;;  %s394_s8 = sshll.u32 %s200_s5, 4  ;;  %s381_s27 = scalar_lea.sflag [#allocation4], %s897_s30  ;;  %s927_s8 = int_to_ptr.vmem [resolvable:$true] %s394_s8 }
  0x59   : > { %534 = vmatprep.subr.bf16.mxu1 %v737_v0  ;;  %v487_v15 = vld [vmem:[%s972_s2 + $0x1] ss:$0 sm:$0xff]  ;;  %v484_v23 = vld [vmem:[%s972_s2] ss:$0 sm:$0xff]  ;;  %s661_s28 = scalar_lea.vmem %s927_s8, 128  ;;  %s740_s16 = smov [#allocation7]  }
  0x5a   : > { %527 = vmatpush3.bf16.msra.mxu0 %v526_v12  ;;  %p662_p4 = scmp.ne.s32.totalorder %s927_s8, %s661_s28  ;;  %s665_s29 = sshll.u32 %s740_s16, 4  ;;  %s666_s29 = int_to_ptr.vmem [resolvable:$false] %s665_s29 }
  0x5b   : > { %528 = vmatprep.subr.bf16.mxu0 %v737_v0  ;;  %s667_s23 = scalar_lea.vmem %s666_s29, 256  ;;  %p668_p10 = scmp.lt.s32.totalorder %s927_s8, %s666_s29 }
  0x5c   : > { %536 = vmatpush3.bf16.msra.mxu1 %v535_v11  ;;  %p663_p6 = pnand %p662_p4, %p852_p12  ;;  %p669_p13 = scmp.lt.s32.totalorder %s667_s23, %s661_s28 }
  0x5e   : > { %530 = vmatpush3.bf16.msra.mxu0 %v529_v13  ;;  %p664_p8 = pneg %p663_p6  ;;  %p670_p3 = por %p669_p13, %p668_p10 }
  0x5f   : > { %523 = vmatmul.mubr.msk.f32.vlgmr.msra.gmra.mrb[0].mxu1 %vm213_vm1, %v201_v14 }
  0x60   : > { %p671_p7 = pnand %p670_p3, %p664_p8 }
  0x61   : > { %512 = vmatmul.mubr.msk.f32.vlgmr.msra.gmra.mrb[0].mxu0 %vm213_vm1, %v201_v14 }
 0x132   : > { %v366_v16 = vpop.f32.mrb[0].mxu1 }
 0x133   : > { %v367_v17 = vadd.f32 %v487_v15, %v366_v16  ;;  %v524_v18 = vpop.f32.mrb[1].mxu1 }
 0x134   : > { %v283_v19 = vpop.f32.mrb[0].mxu0 }
 0x135   : > { %v371_v20 = vsub.f32 0.0, %v367_v17  ;;  %v513_v21 = vpop.f32.mrb[1].mxu0  ;;  %v284_v26 = vadd.f32 %v484_v23, %v283_v19 }
 0x137   : > { %v372_v22 = vmul.f32 1.442695, %v371_v20  ;;  %v370_v27 = vmax.f32 %v284_v26, 0.0 }
 0x139   : > { %599 = vpow2.f32 %v372_v22  ;;  %v376_v28 = vsub.f32 %v370_v27, %v201_v14 }
 0x143   : > { %v600_v24 = vpop.eup %599 }
 0x144   : > { %v374_v25 = vadd.f32 1.0, %v600_v24 }
 0x146   : > { %601 = vrcp.f32 %v374_v25 }
 0x150   : > { %v602_v29 = vpop.eup %601 }
 0x151   : > { %v377_v30 = vmul.f32 %v602_v29, %v376_v28 }
 0x153   : > { %v378_v31 = vadd.f32 %v377_v30, %v201_v14 }
 0x155   : > { %379 = vst.msk [vmem:[%s200_s5] sm:$0xff] %vm213_vm1, %v378_v31 }
 0x156   : > { %674 = shalt.err (!%p671_p7)
}
 0x157   : > { %s675_s30 = scalar_lea.hbm %s925_s11, 128  ;;  %s679_s7 = scalar_lea.hbm %s973_s3, 256 }
 0x158   : > { %p676_p9 = scmp.ne.s32.totalorder %s925_s11, %s675_s30  ;;  %p680_p0 = scmp.lt.u32.totalorder %s925_s11, %s973_s3 }
 0x159   : > { %p681_p11 = scmp.lt.u32.totalorder %s679_s7, %s675_s30  ;;  %p683_p4 = scmp.lt.u32.totalorder %s675_s30, %s925_s11 }
 0x15a   : > { %p677_p2 = pnand %p676_p9, %p852_p12 }
 0x15b   : > { %p682_p1 = por %p681_p11, %p680_p0 }
 0x15c   : > { %p678_p5 = pneg %p677_p2 }
 0x15d   : > { %p684_p6 = por %p683_p4, %p682_p1 }
 0x15f   : > { %p685_p8 = pnand %p684_p6, %p678_p5 }
 0x161   : > { %688 = shalt.err (!%p685_p8)
}
 0x162   : > { %543 = dma.vmem_to_hbm [thread:$0]  (%p852_p12), %s927_s8, 128, %s925_s11, %s381_s27  }
 0x163 PF: > { %s406_s4 = sand.u32 1, %s719_s12   ;;  %p988_p10 = scmp.ne.s32.totalorder %s978_s19, 0 }
 0x164   : > { %p989_p13 = scmp.ge.s32.totalorder %s731_s15, 2  ;;  %s407_s25 = scalar_lea.sflag [#allocation4], %s406_s4 }
 0x166   : > { %p554_p3 = pnand %p989_p13, %p988_p10 }
 0x168   : > { %714 = dma.done.wait (!%p554_p3), %s407_s25, 128  }
 0x169   : > { %716 = vsyncadd (!%p554_p3), %s407_s25, 4294967168  ;;  %p17_p7 = scmp.ge.s32.totalorder %s817_s24, 4   ;;  %s990_s12 = smov %s723_s13 }
 0x16a   : > { %s991_s13 = smov %s727_s14  ;;  %s992_s14 = smov %s848_s17 }
 0x16b   : > { %s993_s15 = smov %s817_s24  ;;  %19 = sbr.rel (!%p17_p7) target bundleno = 6 (0x6), region = 83 }
 0x172   :  { %412 = vsyncpa [#allocation3], 1 }
 0x173   :  { %414 = vsyncpa [#allocation3 + $0x1], 1 }
 0x174   :  { %415 = vsyncpa [#allocation6], 1 }
 0x175   :  { %416 = vsyncpa [#allocation4], 1 }
 0x176   :  { %418 = vsyncpa [#allocation4 + $0x1], 1 }

</bundles_post_ra>
